<compile_context>
chip_gen: v7x
topology: tpu7x:2x2x1
jax: 0.10.0
libtpu: 0.0.40
codegen_flags: <defaults>
</compile_context>

<pallas_src>
import jax
import jax.numpy as jnp
from jax import lax
from jax.experimental import pallas as pl
from jax.experimental.pallas import tpu as pltpu


def _round_up(x, m):
    return ((x + m - 1) // m) * m


def _pick_tile(dim, prefs):
    for p in prefs:
        if p <= dim and dim % p == 0:
            return p
    return dim


def _vmem_limit(block_bytes):
    """Scoped-VMEM limit sized from the per-grid-step block bytes (double-buffered + margin)."""
    need = 2 * block_bytes + (4 << 20)
    return int(min(max(need, 32 << 20), 64 << 20))


# ----------------------- tiled matmul + bias (hoisted input projection) -----------------------
def matmul_bias_fullk_kernel(x_ref, w_ref, b_ref, o_ref):
    """Whole K in one block: no k axis, no accumulator scratch."""
    o_ref[...] = (jnp.dot(x_ref[...], w_ref[...], preferred_element_type=jnp.float32)
                  + b_ref[...]).astype(o_ref.dtype)


def matmul_bias_ksplit_kernel(x_ref, w_ref, b_ref, o_ref, acc_ref):
    """out[i,j] = sum_k x[i,k] @ w[k,j] + b[0,j]; bf16 operands, f32 accumulate."""
    @pl.when(pl.program_id(2) == 0)
    def _():
        acc_ref[...] = jnp.zeros_like(acc_ref)

    acc_ref[...] += jnp.dot(x_ref[...], w_ref[...], preferred_element_type=jnp.float32)

    @pl.when(pl.program_id(2) == pl.num_programs(2) - 1)
    def _():
        o_ref[...] = (acc_ref[...] + b_ref[...]).astype(o_ref.dtype)


def run_matmul_bias(x, w, b, out_dtype=jnp.float32):
    """x: (M, K) bf16, w: (K, N) bf16, b: (1, N) f32 -> (M, N) out_dtype.

    Caller guarantees M % 8 == 0, N % 128 == 0, K % 128 == 0 (zero padded)."""
    M, K = x.shape
    N = w.shape[1]
    out_bytes = jnp.dtype(out_dtype).itemsize
    tm = _pick_tile(M, (512, 256, 128, 64, 32, 16, 8))
    tn = _pick_tile(N, (512, 256, 128))
    # Prefer taking the whole K in one block (drops the k grid axis + accumulator); fall back
    # to tiling K only when the operand blocks would get large.
    if (tm * K + K * tn) * x.dtype.itemsize <= (8 << 20):
        tk = K
    else:
        tk = _pick_tile(K, (2048, 1024, 512, 256, 128))

    blk_bytes = (tm * tk * x.dtype.itemsize + tk * tn * w.dtype.itemsize
                 + tn * 4 + tm * tn * out_bytes + tm * tn * 4)

    if tk == K:
        return pl.pallas_call(
            matmul_bias_fullk_kernel,
            out_shape=jax.ShapeDtypeStruct((M, N), out_dtype),
            grid=(M // tm, N // tn),
            in_specs=[
                pl.BlockSpec((tm, K), lambda i, j: (i, 0)),
                pl.BlockSpec((K, tn), lambda i, j: (0, j)),
                pl.BlockSpec((1, tn), lambda i, j: (0, j)),
            ],
            out_specs=pl.BlockSpec((tm, tn), lambda i, j: (i, j)),
            compiler_params=pltpu.CompilerParams(
                dimension_semantics=("parallel", "parallel"),
                vmem_limit_bytes=_vmem_limit(blk_bytes)),
        )(x, w, b)

    return pl.pallas_call(
        matmul_bias_ksplit_kernel,
        out_shape=jax.ShapeDtypeStruct((M, N), out_dtype),
        grid=(M // tm, N // tn, K // tk),
        in_specs=[
            pl.BlockSpec((tm, tk), lambda i, j, k: (i, k)),
            pl.BlockSpec((tk, tn), lambda i, j, k: (k, j)),
            pl.BlockSpec((1, tn), lambda i, j, k: (0, j)),
        ],
        out_specs=pl.BlockSpec((tm, tn), lambda i, j, k: (i, j)),
        scratch_shapes=[pltpu.VMEM((tm, tn), jnp.float32)],
        compiler_params=pltpu.CompilerParams(
            dimension_semantics=("parallel", "parallel", "arbitrary"),
            vmem_limit_bytes=_vmem_limit(blk_bytes)),
    )(x, w, b)


# --------------------------- LSTM recurrence (input projection hoisted) --------------------------
def lstm_kernel(xp_ref, whh_ref, out_ref, h_sc, c_sc):
    """Serial recurrence over one time chunk.

    xp_ref  : (T_CHUNK, Bp, 4*Hp) bf16  precomputed x @ W_ih + (b_ih + b_hh), gate-lane-aligned
    whh_ref : (Hp, 4*Hp) bf16           recurrent weights, gate-lane-aligned (order i,f,o,g)
    out_ref : (T_CHUNK, Bp, Hp) bf16    hidden states for this chunk
    h_sc/c_sc : (Bp, Hp) f32 scratch    state; persists across grid steps (time chunks)
    """
    @pl.when(pl.program_id(0) == 0)
    def _():
        h_sc[...] = jnp.zeros_like(h_sc)
        c_sc[...] = jnp.zeros_like(c_sc)

    tc = xp_ref.shape[0]
    Hp = h_sc.shape[1]

    def step(t, carry):
        h = h_sc[...]
        c = c_sc[...]
        # TODO(synk): weight-stationary MXU (pltpu.matmul_push_rhs) would keep W_hh resident
        # across steps and shorten the serial critical path for larger H.
        gates = xp_ref[t].astype(jnp.float32) + jnp.dot(
            h.astype(whh_ref.dtype), whh_ref[...], preferred_element_type=jnp.float32)
        sig = jax.nn.sigmoid(gates[:, :3 * Hp])          # one wide EUP dispatch: i | f | o
        i_g = sig[:, 0 * Hp:1 * Hp]
        f_g = sig[:, 1 * Hp:2 * Hp]
        o_g = sig[:, 2 * Hp:3 * Hp]
        g_g = jnp.tanh(gates[:, 3 * Hp:4 * Hp])
        c_new = f_g * c + i_g * g_g
        h_new = o_g * jnp.tanh(c_new)
        c_sc[...] = c_new
        h_sc[...] = h_new
        out_ref[t] = h_new.astype(out_ref.dtype)
        return carry

    lax.fori_loop(0, tc, step, 0, unroll=True if tc <= 8 else 4)


def run_lstm(xp, whh_bf16, t_chunk):
    """xp: (Tp, Bp, 4*Hp) bf16, whh: (Hp, 4*Hp) bf16 -> (Tp, Bp, Hp) bf16."""
    T, Bp, H4 = xp.shape
    Hp = whh_bf16.shape[0]
    blk_bytes = (t_chunk * Bp * H4 * 2 + Hp * H4 * 2 + t_chunk * Bp * Hp * 2 + 2 * Bp * Hp * 4)
    return pl.pallas_call(
        lstm_kernel,
        out_shape=jax.ShapeDtypeStruct((T, Bp, Hp), jnp.bfloat16),
        grid=(T // t_chunk,),
        in_specs=[
            pl.BlockSpec((t_chunk, Bp, H4), lambda t: (t, 0, 0)),
            # W_hh is grid-invariant: block index never changes so it is DMA'd only once.
            # TODO(synk): on v7x with H >= 1024, single-buffer it (pipeline_mode=pl.Buffered(1))
            # and/or split batch across the two TensorCores with a leading parallel grid axis.
            pl.BlockSpec((Hp, H4), lambda t: (0, 0)),
        ],
        out_specs=pl.BlockSpec((t_chunk, Bp, Hp), lambda t: (t, 0, 0)),
        scratch_shapes=[pltpu.VMEM((Bp, Hp), jnp.float32),
                        pltpu.VMEM((Bp, Hp), jnp.float32)],
        compiler_params=pltpu.CompilerParams(
            dimension_semantics=("arbitrary",),   # recurrence: must stay sequential
            vmem_limit_bytes=_vmem_limit(blk_bytes)),
    )(xp, whh_bf16)


# ----------------- output projection fused with the (B,T,V)->(B,V,T) permute -----------------
def out_proj_permute_kernel(rnn_ref, w_ref, b_ref, o_ref):
    """out[b, v, t] = sum_h rnn[t, b, h] * W[h, v] + bias[v], written directly in (B,V,T) layout.

    rnn_ref : (Tp, Bp, Hp) bf16  time-major hidden states (full array, DMA'd once)
    w_ref   : (Hp, tn) bf16      vocab tile of W_out^T
    b_ref   : (1, tn) f32
    o_ref   : (Bp, tn, Tp) f32   output tile
    """
    Bp = rnn_ref.shape[1]
    w = w_ref[...]
    bias = b_ref[...]
    for b in range(Bp):                                                 # static unroll over batch
        xb = rnn_ref[:, b, :]                                           # (Tp, Hp)
        lb = jnp.dot(xb, w, preferred_element_type=jnp.float32) + bias  # (Tp, tn) f32
        o_ref[b] = lb.T.astype(o_ref.dtype)                             # XLU transpose -> (tn, Tp)


def run_out_proj_permute(rnn, w_out, b_out):
    """rnn: (Tp, Bp, Hp) bf16, w_out: (Hp, Vp) bf16, b_out: (1, Vp) f32 -> (Bp, Vp, Tp) f32."""
    Tp, Bp, Hp = rnn.shape
    Vp = w_out.shape[1]
    tn = _pick_tile(Vp, (512, 256, 128))
    # TODO(synk): for very long sequences also tile Tp (multiples of 128) to bound the out block.
    blk_bytes = (Tp * Bp * Hp * 2 + Hp * tn * 2 + tn * 4 + Bp * tn * Tp * 4)
    return pl.pallas_call(
        out_proj_permute_kernel,
        out_shape=jax.ShapeDtypeStruct((Bp, Vp, Tp), jnp.float32),
        grid=(Vp // tn,),
        in_specs=[
            pl.BlockSpec((Tp, Bp, Hp), lambda j: (0, 0, 0)),
            pl.BlockSpec((Hp, tn), lambda j: (0, j)),
            pl.BlockSpec((1, tn), lambda j: (0, j)),
        ],
        out_specs=pl.BlockSpec((Bp, tn, Tp), lambda j: (0, j, 0)),
        compiler_params=pltpu.CompilerParams(
            dimension_semantics=("parallel",),
            vmem_limit_bytes=_vmem_limit(blk_bytes)),
    )(rnn, w_out, b_out)


# ------------------------------------ weight packing helpers ------------------------------------
_GATE_ORDER = (0, 1, 3, 2)   # pack PyTorch (i, f, g, o) gates as (i, f, o, g)


def _pack_gate_matrix(w_pt, in_pad, H, Hp):
    """PyTorch (4H, in_dim) -> transposed, zero-padded, gate-lane-aligned (in_pad, 4*Hp)."""
    in_dim = w_pt.shape[1]
    out = jnp.zeros((in_pad, 4 * Hp), jnp.float32)
    for slot, g in enumerate(_GATE_ORDER):
        out = out.at[:in_dim, slot * Hp:slot * Hp + H].set(w_pt[g * H:(g + 1) * H, :].T)
    return out


def _pack_gate_bias(b, H, Hp):
    out = jnp.zeros((1, 4 * Hp), jnp.float32)
    for slot, g in enumerate(_GATE_ORDER):
        out = out.at[0, slot * Hp:slot * Hp + H].set(b[g * H:(g + 1) * H])
    return out


# --------------------------------------- model wrapper ------------------------------------------
def init_params(key, vocab_size, emb_size, hidden_size, pad_index=0):
    ks = jax.random.split(key, 7)
    H4 = 4 * hidden_size
    emb_w = jax.random.normal(ks[0], (vocab_size, emb_size), jnp.float32) * 0.1
    emb_w = emb_w.at[pad_index].set(0.0)            # nn.Embedding(padding_idx=...)
    w_ih = jax.random.normal(ks[1], (H4, emb_size), jnp.float32) * 0.1
    w_hh = jax.random.normal(ks[2], (H4, hidden_size), jnp.float32) * 0.1
    b_ih = jax.random.normal(ks[3], (H4,), jnp.float32) * 0.1
    b_hh = jax.random.normal(ks[4], (H4,), jnp.float32) * 0.1
    w_out = jax.random.normal(ks[5], (vocab_size, hidden_size), jnp.float32) * 0.1
    b_out = jax.random.normal(ks[6], (vocab_size,), jnp.float32) * 0.1
    return dict(emb_w=emb_w, w_ih=w_ih, w_hh=w_hh, b_ih=b_ih, b_hh=b_hh,
                w_out=w_out, b_out=b_out)


def lm_lstm_forward(params, input_sequence):
    """input_sequence: (B, T) int32 -> output: (B, V, T) f32 (matches .permute(0, 2, 1))."""
    B, T = input_sequence.shape
    V, E = params["emb_w"].shape
    H = params["w_hh"].shape[1]

    Bp = _round_up(B, 16)     # bf16 sublane packing granule -> unmasked hidden-state stores
    Ep = _round_up(E, 128)    # lane granule
    Hp = _round_up(H, 128)
    Vp = _round_up(V, 128)
    Tp = _round_up(T, 8)      # keeps t_chunk / transpose sublane dims tile-friendly

    # -- embedding lookup (data-dependent gather kept in XLA glue) --
    # TODO(synk): jnp.take clamps out-of-range token ids instead of raising like nn.Embedding.
    emb = jnp.take(params["emb_w"], input_sequence, axis=0)             # (B, T, E)

    # time-major + zero pad to (Tp, Bp, Ep).  Padded gate LANES stay exactly zero through the
    # recurrence (zero weights/bias there); padded batch rows / trailing time steps do real but
    # harmless work and are sliced off at the end.
    emb_t = jnp.transpose(emb, (1, 0, 2))                                # (T, B, E)
    emb_t = jnp.pad(emb_t, ((0, Tp - T), (0, Bp - B), (0, Ep - E)))
    x_flat = emb_t.reshape(Tp * Bp, Ep).astype(jnp.bfloat16)

    # -- pack weights once: padded, transposed, gate-lane-aligned (i,f,o,g), bf16 for MXU --
    w_ih_p = _pack_gate_matrix(params["w_ih"], Ep, H, Hp).astype(jnp.bfloat16)   # (Ep, 4Hp)
    w_hh_p = _pack_gate_matrix(params["w_hh"], Hp, H, Hp).astype(jnp.bfloat16)   # (Hp, 4Hp)
    bias_p = _pack_gate_bias(params["b_ih"] + params["b_hh"], H, Hp)             # (1, 4Hp) f32
    w_out_p = jnp.zeros((Hp, Vp), jnp.float32).at[:H, :V].set(params["w_out"].T)
    w_out_p = w_out_p.astype(jnp.bfloat16)                                       # (Hp, Vp)
    b_out_p = jnp.zeros((1, Vp), jnp.float32).at[0, :V].set(params["b_out"])     # (1, Vp)

    # -- 1) hoisted input projection: one tiled MXU matmul (+ bias), stored bf16 --
    xp = run_matmul_bias(x_flat, w_ih_p, bias_p, out_dtype=jnp.bfloat16)          # (Tp*Bp, 4Hp)
    xp = xp.reshape(Tp, Bp, 4 * Hp)

    # -- 2) serial recurrence, time-chunked grid with persistent h/c VMEM scratch --
    t_chunk = _pick_tile(Tp, (64, 32, 16, 8))
    rnn = run_lstm(xp, w_hh_p, t_chunk)                                           # (Tp, Bp, Hp) bf16

    # -- 3) output projection fused with the (B,T,V)->(B,V,T) permute (no XLA transpose) --
    out = run_out_proj_permute(rnn, w_out_p, b_out_p)                             # (Bp, Vp, Tp) f32

    return out[:B, :V, :T]


# ------------------------------- pure-JAX reference for sanity ----------------------------------
def ref_forward(params, input_sequence):
    B, T = input_sequence.shape
    H = params["w_hh"].shape[1]
    emb = jnp.take(params["emb_w"], input_sequence, axis=0)
    bias = params["b_ih"] + params["b_hh"]

    def cell(carry, x_t):
        h, c = carry
        gates = x_t @ params["w_ih"].T + h @ params["w_hh"].T + bias
        i, f, g, o = jnp.split(gates, 4, axis=-1)
        c = jax.nn.sigmoid(f) * c + jax.nn.sigmoid(i) * jnp.tanh(g)
        h = jax.nn.sigmoid(o) * jnp.tanh(c)
        return (h, c), h

    h0 = jnp.zeros((B, H), jnp.float32)
    _, hs = lax.scan(cell, (h0, h0), jnp.transpose(emb, (1, 0, 2)))
    rnn_out = jnp.transpose(hs, (1, 0, 2))                               # (B, T, H)
    logits = rnn_out @ params["w_out"].T + params["b_out"]
    return jnp.transpose(logits, (0, 2, 1))                              # (B, V, T)


if __name__ == "__main__":
    B, T = 2, 8
    emb_size, hidden_size, output_size, pad_index = 32, 32, 64, 0

    key = jax.random.PRNGKey(0)
    pkey, dkey = jax.random.split(key)
    params = init_params(pkey, output_size, emb_size, hidden_size, pad_index)
    input_sequence = jax.random.randint(dkey, (B, T), 1, output_size, dtype=jnp.int32)

    out = jax.block_until_ready(lm_lstm_forward(params, input_sequence))
    assert out.shape == (B, output_size, T), out.shape

    ref = jax.block_until_ready(ref_forward(params, input_sequence))
    max_err = float(jnp.max(jnp.abs(out - ref)))
    # bf16 MXU operands + bf16 xp / hidden-state intermediates vs pure-f32 reference
    assert jnp.allclose(out, ref, atol=2e-2, rtol=2e-2), f"mismatch vs reference: {max_err}"

    print("KERNEL_OK")
</pallas_src>

<mosaic_0001>
module attributes {stable_mosaic.version = 11 : i64} {
  func.func @matmul_bias_fullk_kernel(%arg0: i32, %arg1: i32, %arg2: memref<128x128xbf16, #tpu.memory_space<vmem>>, %arg3: memref<128x512xbf16, #tpu.memory_space<vmem>>, %arg4: memref<1x512xf32, #tpu.memory_space<vmem>>, %arg5: memref<128x512xbf16, #tpu.memory_space<vmem>>) attributes {dimension_semantics = [#tpu.dimension_semantics<parallel>, #tpu.dimension_semantics<parallel>], iteration_bounds = array<i64: 1, 1>, scalar_prefetch = 0 : i64, scratch_operands = 0 : i64, tpu.core_type = #tpu.core_type<tc>, window_params = [{transform_indices = @transform_0, window_bounds = array<i64: 128, 128>}, {transform_indices = @transform_1, window_bounds = array<i64: 128, 512>}, {transform_indices = @transform_2, window_bounds = array<i64: 1, 512>}, {transform_indices = @transform_3, window_bounds = array<i64: 128, 512>}]} {
    %c0 = arith.constant 0 : index
    %c0_0 = arith.constant 0 : index
    %0 = vector.load %arg2[%c0, %c0_0] : memref<128x128xbf16, #tpu.memory_space<vmem>>, vector<128x128xbf16>
    %c0_1 = arith.constant 0 : index
    %c0_2 = arith.constant 0 : index
    %1 = vector.load %arg3[%c0_1, %c0_2] : memref<128x512xbf16, #tpu.memory_space<vmem>>, vector<128x512xbf16>
    %cst = arith.constant dense<0.000000e+00> : vector<128x512xf32>
    %2 = tpu.matmul %0, %1, %cst {dimension_numbers = #tpu.dot_dimension_numbers<[1], [0], [0], [1], [0, 0, 1, 1], [], []>} : vector<128x128xbf16>, vector<128x512xbf16>, vector<128x512xf32> -> vector<128x512xf32>
    %c0_3 = arith.constant 0 : index
    %c0_4 = arith.constant 0 : index
    %3 = vector.load %arg4[%c0_3, %c0_4] : memref<1x512xf32, #tpu.memory_space<vmem>>, vector<1x512xf32>
    %4 = vector.broadcast %3 : vector<1x512xf32> to vector<128x512xf32>
    %5 = arith.addf %2, %4 : vector<128x512xf32>
    %6 = arith.truncf %5 : vector<128x512xf32> to vector<128x512xbf16>
    %c0_5 = arith.constant 0 : index
    %c0_6 = arith.constant 0 : index
    %7 = vector.load %arg5[%c0_5, %c0_6] : memref<128x512xbf16, #tpu.memory_space<vmem>>, vector<128x512xbf16>
    tpu.vector_store %arg5[%c0_5, %c0_6], %6 {strides = array<i32>} : memref<128x512xbf16, #tpu.memory_space<vmem>>, vector<128x512xbf16>,
    return
  }
  func.func @transform_0(%arg0: i32, %arg1: i32) -> (i32, i32) {
    %c0_i32 = arith.constant 0 : i32
    %c0_i32_0 = arith.constant 0 : i32
    return %arg0, %c0_i32 : i32, i32
  }
  func.func @transform_1(%arg0: i32, %arg1: i32) -> (i32, i32) {
    %c0_i32 = arith.constant 0 : i32
    %c0_i32_0 = arith.constant 0 : i32
    return %c0_i32, %arg1 : i32, i32
  }
  func.func @transform_2(%arg0: i32, %arg1: i32) -> (i32, i32) {
    %c0_i32 = arith.constant 0 : i32
    %c0_i32_0 = arith.constant 0 : i32
    return %c0_i32, %arg1 : i32, i32
  }
  func.func @transform_3(%arg0: i32, %arg1: i32) -> (i32, i32) {
    %c0_i32 = arith.constant 0 : i32
    return %arg0, %arg1 : i32, i32
  }
}

</mosaic_0001>

<bundles_post_ra>
// kernel: tpu_custom_call.1
= control target key start
LH: loop header
LB: loop body
LE: loop exit
PB: predicated region body
PF: predicated region fallthrough
CT: control target
= control target key end

     0   :  { %8 = vsyncpa [#allocation3], 0  ;;  %s1191_s0 = inlined_call_operand.hbm [shape: bf16[128,128], index: 0, kind: input, shape index: {}]   ;;  %s1192_s1 = inlined_call_operand.hbm [shape: bf16[128,512], index: 1, kind: input, shape index: {}]   ;;  %s1193_s2 = inlined_call_operand.vmem [shape: f32[1,512], index: 2, kind: input, shape index: {}]   ;;  %s1194_s3 = inlined_call_operand.hbm [shape: bf16[128,512], index: 3, kind: output, shape index: {}]  }
   0x1   :  { %9 = vsyncpa [#allocation6], 0 }
   0x2   :  { %10 = vsyncpa [#allocation4], 0  ;;  %s1030_s12 = smov [#allocation2]   ;;  %s958_s16 = scalar_lea.hbm %s1191_s0, 1024 }
   0x3   :  { %s16_s13 = sshll.u32 %s1030_s12, 4  ;;  %p959_p0 = scmp.ne.s32.totalorder %s1191_s0, %s958_s16  ;;  %s17_s13 = int_to_ptr.vmem [resolvable:$true] %s16_s13 }
   0x4   :  { %p962_p1 = scmp.lt.u32.totalorder %s958_s16, %s1191_s0 }
   0x6   :  { %p964_p2 = pnand %p962_p1, %p959_p0 }
   0x8   :  { %967 = shalt.err (!%p964_p2)
}
   0x9   :  { %s968_s21 = scalar_lea.vmem %s17_s13, 1024  ;;  %p973_p4 = scmp.lt.s32.totalorder %s17_s13, %s17_s13 }
   0xa   :  { %p969_p3 = scmp.ne.s32.totalorder %s17_s13, %s968_s21  ;;  %p974_p5 = scmp.lt.s32.totalorder %s968_s21, %s968_s21 }
   0xc   :  { %p975_p6 = por %p974_p5, %p973_p4 }
   0xe   :  { %p976_p7 = pnand %p975_p6, %p969_p3 }
  0x10   :  { %979 = shalt.err (!%p976_p7)
}
  0x11   :  { %s1031_s22 = smov 64   ;;  %s1032_s23 = smov 4  }
  0x12   :  { %22 = dma.hbm_to_vmem [thread:$0]  %s1191_s0, 1024, %s17_s13, [#allocation3], %s1031_s22, %s1031_s22, %s1032_s23  }
  0x13   :  { %s1033_s26 = smov [#allocation5]   ;;  %s980_s30 = scalar_lea.hbm %s1192_s1, 4096 }
  0x14   :  { %s28_s27 = sshll.u32 %s1033_s26, 4  ;;  %p981_p8 = scmp.ne.s32.totalorder %s1192_s1, %s980_s30  ;;  %s29_s27 = int_to_ptr.vmem [resolvable:$true] %s28_s27 }
  0x15   :  { %p984_p9 = scmp.lt.u32.totalorder %s980_s30, %s1192_s1 }
  0x17   :  { %p986_p10 = pnand %p984_p9, %p981_p8 }
  0x19   :  { %989 = shalt.err (!%p986_p10)
}
  0x1a   :  { %s990_s8 = scalar_lea.vmem %s29_s27, 4096  ;;  %p995_p12 = scmp.lt.s32.totalorder %s29_s27, %s29_s27 }
  0x1b   :  { %p991_p11 = scmp.ne.s32.totalorder %s29_s27, %s990_s8  ;;  %p996_p13 = scmp.lt.s32.totalorder %s990_s8, %s990_s8 }
  0x1d   :  { %p997_p0 = por %p996_p13, %p995_p12 }
  0x1f   :  { %p998_p1 = pnand %p997_p0, %p991_p11 }
  0x21   :  { %1001 = shalt.err (!%p998_p1)
}
  0x22   :  { %s1034_s0 = smov 256   ;;  %s1035_s9 = smov 16  }
  0x23   :  { %34 = dma.hbm_to_vmem [thread:$0]  %s1192_s1, 4096, %s29_s27, [#allocation6], %s1034_s0, %s1034_s0, %s1035_s9  }
  0x24   :  { %1024 = dma.done.wait [#allocation3], 1024  }
  0x25   :  { %1025 = vsyncadd [#allocation3], 4294966272 }
  0x26   :  { %1026 = dma.done.wait [#allocation6], 4096  }
  0x27   :  { %1027 = vsyncadd [#allocation6], 4294963200  ;;  %v1036_v0 = vmov 0   ;;  %v902_v1 = vld [vmem:[#allocation5 + $0x4] ss:$16 sps:$4 sm:$0xff]   ;;  %v951_v34 = vld [vmem:[#allocation2 + $0x8] sm:$0xff]   ;;  %v94_v41 = vlaneseq }
  0x28   :  { %354 = vmatprep.mubr.bf16.mxu0 %v1036_v0  ;;  %467 = vmatprep.mubr.bf16.mxu1 %v1036_v0  ;;  %v904_v2 = vld [vmem:[#allocation5 + $0xc] ss:$16 sps:$4 sm:$0xff]   ;;  %v906_v3 = vld [vmem:[#allocation5] ss:$16 sps:$4 sm:$0xff]   ;;  %v907_v4 = vld [vmem:[#allocation5 + $0x8] ss:$16 sps:$4 sm:$0xff]  }
  0x29   :  { %322 = vmatprep.subr.bf16.mxu0 %v902_v1  ;;  %435 = vmatprep.subr.bf16.mxu1 %v904_v2  ;;  %v908_v5 = vld [vmem:[#allocation5 + $0x24] ss:$16 sps:$4 sm:$0xff]   ;;  %v910_v6 = vld [vmem:[#allocation5 + $0x2c] ss:$16 sps:$4 sm:$0xff]   ;;  %v912_v7 = vld [vmem:[#allocation5 + $0x20] ss:$16 sps:$4 sm:$0xff]  }
  0x2a   :  { %323 = vmatpush1.bf16.msra.mxu0 %v906_v3  ;;  %436 = vmatpush1.bf16.msra.mxu1 %v907_v4  ;;  %v913_v8 = vld [vmem:[#allocation5 + $0x28] ss:$16 sps:$4 sm:$0xff]   ;;  %v914_v9 = vld [vmem:[#allocation5 + $0x44] ss:$16 sps:$4 sm:$0xff]   ;;  %v916_v10 = vld [vmem:[#allocation5 + $0x4c] ss:$16 sps:$4 sm:$0xff]  }
  0x2b   :  { %324 = vmatprep.subr.bf16.mxu0 %v908_v5  ;;  %437 = vmatprep.subr.bf16.mxu1 %v910_v6  ;;  %v918_v11 = vld [vmem:[#allocation5 + $0x40] ss:$16 sps:$4 sm:$0xff]   ;;  %v919_v12 = vld [vmem:[#allocation5 + $0x48] ss:$16 sps:$4 sm:$0xff]   ;;  %v920_v13 = vld [vmem:[#allocation5 + $0x64] ss:$16 sps:$4 sm:$0xff]  }
  0x2c   :  { %v922_v14 = vld [vmem:[#allocation5 + $0x6c] ss:$16 sps:$4 sm:$0xff]   ;;  %v924_v15 = vld [vmem:[#allocation5 + $0x60] ss:$16 sps:$4 sm:$0xff]   ;;  %v925_v16 = vld [vmem:[#allocation5 + $0x68] ss:$16 sps:$4 sm:$0xff]  }
  0x2d   :  { %v926_v17 = vld [vmem:[#allocation5 + $0x84] ss:$16 sps:$4 sm:$0xff]   ;;  %v928_v18 = vld [vmem:[#allocation5 + $0x8c] ss:$16 sps:$4 sm:$0xff]   ;;  %v930_v19 = vld [vmem:[#allocation5 + $0x80] ss:$16 sps:$4 sm:$0xff]  }
  0x2e   :  { %325 = vmatpush1.bf16.msra.mxu0 %v912_v7  ;;  %438 = vmatpush1.bf16.msra.mxu1 %v913_v8  ;;  %v931_v20 = vld [vmem:[#allocation5 + $0x88] ss:$16 sps:$4 sm:$0xff]   ;;  %v932_v21 = vld [vmem:[#allocation5 + $0xa4] ss:$16 sps:$4 sm:$0xff]   ;;  %v934_v22 = vld [vmem:[#allocation5 + $0xac] ss:$16 sps:$4 sm:$0xff]  }
  0x2f   :  { %326 = vmatprep.subr.bf16.mxu0 %v914_v9  ;;  %439 = vmatprep.subr.bf16.mxu1 %v916_v10  ;;  %v936_v23 = vld [vmem:[#allocation5 + $0xa0] ss:$16 sps:$4 sm:$0xff]   ;;  %v937_v24 = vld [vmem:[#allocation5 + $0xa8] ss:$16 sps:$4 sm:$0xff]   ;;  %v938_v25 = vld [vmem:[#allocation5 + $0xc4] ss:$16 sps:$4 sm:$0xff]  }
  0x30   :  { %v940_v26 = vld [vmem:[#allocation5 + $0xcc] ss:$16 sps:$4 sm:$0xff]   ;;  %v942_v27 = vld [vmem:[#allocation5 + $0xc0] ss:$16 sps:$4 sm:$0xff]   ;;  %v943_v28 = vld [vmem:[#allocation5 + $0xc8] ss:$16 sps:$4 sm:$0xff]  }
  0x31   :  { %v944_v29 = vld [vmem:[#allocation5 + $0xe4] ss:$16 sps:$4 sm:$0xff]   ;;  %v946_v30 = vld [vmem:[#allocation5 + $0xec] ss:$16 sps:$4 sm:$0xff]   ;;  %v948_v31 = vld [vmem:[#allocation5 + $0xe0] ss:$16 sps:$4 sm:$0xff]  }
  0x32   :  { %327 = vmatpush1.bf16.msra.mxu0 %v918_v11  ;;  %440 = vmatpush1.bf16.msra.mxu1 %v919_v12  ;;  %v949_v32 = vld [vmem:[#allocation5 + $0xe8] ss:$16 sps:$4 sm:$0xff]   ;;  %v950_v33 = vld [vmem:[#allocation2] sm:$0xff]   ;;  %v952_v35 = vld [vmem:[#allocation2 + $0x10] sm:$0xff]   ;;  %v95_v42 = vshrl.u32 %v94_v41, 7 }
  0x33   :  { %328 = vmatprep.subr.bf16.mxu0 %v920_v13  ;;  %441 = vmatprep.subr.bf16.mxu1 %v922_v14  ;;  %v953_v36 = vld [vmem:[#allocation2 + $0x18] sm:$0xff]   ;;  %v954_v37 = vld [vmem:[#allocation2 + $0x20] sm:$0xff]   ;;  %v955_v38 = vld [vmem:[#allocation2 + $0x28] sm:$0xff]  }
  0x34   :  { %v956_v39 = vld [vmem:[#allocation2 + $0x30] sm:$0xff]   ;;  %v957_v40 = vld [vmem:[#allocation2 + $0x38] sm:$0xff]   ;;  %v96_v43 = vsub.s32 0, %v95_v42  ;;  %v104_v44 = vsub.s32 2, %v95_v42  ;;  %v92_v45 = vld [vmem:[%s1193_s2] sm:$0xf] }
  0x35   :  { %v100_v46 = vsub.s32 1, %v95_v42  ;;  %v108_v47 = vsub.s32 3, %v95_v42  ;;  %s1037_s2 = smov [#allocation7]  }
  0x36   :  { %329 = vmatpush1.bf16.msra.mxu0 %v924_v15  ;;  %442 = vmatpush1.bf16.msra.mxu1 %v925_v16  ;;  %v1104_v48 = vrot.slane %v92_v45, %v96_v43  ;;  %v1106_v49 = vrot.slane %v92_v45, %v104_v44  ;;  %s777_s13 = sshll.u32 %s1037_s2, 4  ;;  %s778_s13 = int_to_ptr.vmem [resolvable:$true] %s777_s13 }
  0x37   :  { %330 = vmatprep.subr.bf16.mxu0 %v926_v17  ;;  %443 = vmatprep.subr.bf16.mxu1 %v928_v18  ;;  %v1108_v50 = vrot.slane %v92_v45, %v100_v46  ;;  %v1110_v51 = vrot.slane %v92_v45, %v108_v47  ;;  %s1002_s14 = scalar_lea.vmem %s778_s13, 4096  ;;  %p1007_p3 = scmp.lt.s32.totalorder %s778_s13, %s778_s13 }
  0x38   :  { %p1003_p2 = scmp.ne.s32.totalorder %s778_s13, %s1002_s14  ;;  %p1008_p4 = scmp.lt.s32.totalorder %s1002_s14, %s1002_s14 }
  0x3a   :  { %331 = vmatpush1.bf16.msra.mxu0 %v930_v19  ;;  %444 = vmatpush1.bf16.msra.mxu1 %v931_v20  ;;  %p1009_p5 = por %p1008_p4, %p1007_p3 }
  0x3b   :  { %332 = vmatprep.subr.bf16.mxu0 %v932_v21  ;;  %445 = vmatprep.subr.bf16.mxu1 %v934_v22 }
  0x3c   :  { %p1010_p6 = pnand %p1009_p5, %p1003_p2 }
  0x3e   :  { %333 = vmatpush1.bf16.msra.mxu0 %v936_v23  ;;  %446 = vmatpush1.bf16.msra.mxu1 %v937_v24 }
  0x3f   :  { %334 = vmatprep.subr.bf16.mxu0 %v938_v25  ;;  %447 = vmatprep.subr.bf16.mxu1 %v940_v26 }
  0x42   :  { %335 = vmatpush1.bf16.msra.mxu0 %v942_v27  ;;  %448 = vmatpush1.bf16.msra.mxu1 %v943_v28 }
  0x43   :  { %336 = vmatprep.subr.bf16.mxu0 %v944_v29  ;;  %449 = vmatprep.subr.bf16.mxu1 %v946_v30 }
  0x46   :  { %337 = vmatpush1.bf16.msra.mxu0 %v948_v31  ;;  %450 = vmatpush1.bf16.msra.mxu1 %v949_v32 }
  0x49   :  { %355 = vmatmul.mubr.bf16.vlgmr.msra.gmra.mrb[0].mxu0 %v950_v33  ;;  %468 = vmatmul.mubr.bf16.vlgmr.msra.gmra.mrb[0].mxu1 %v950_v33 }
  0x4a   :  { %364 = vmatprep.mubr.bf16.mxu0 %v1036_v0  ;;  %477 = vmatprep.mubr.bf16.mxu1 %v1036_v0 }
  0x51   :  { %365 = vmatmul.mubr.bf16.gmra.mrb[4].mxu0 %v951_v34  ;;  %478 = vmatmul.mubr.bf16.gmra.mrb[4].mxu1 %v951_v34 }
  0x52   :  { %374 = vmatprep.mubr.bf16.mxu0 %v1036_v0  ;;  %487 = vmatprep.mubr.bf16.mxu1 %v1036_v0 }
  0x59   :  { %375 = vmatmul.mubr.bf16.gmra.mrb[8].mxu0 %v952_v35  ;;  %488 = vmatmul.mubr.bf16.gmra.mrb[8].mxu1 %v952_v35 }
  0x5a   :  { %384 = vmatprep.mubr.bf16.mxu0 %v1036_v0  ;;  %497 = vmatprep.mubr.bf16.mxu1 %v1036_v0 }
  0x61   :  { %385 = vmatmul.mubr.bf16.gmra.mrb[12].mxu0 %v953_v36  ;;  %498 = vmatmul.mubr.bf16.gmra.mrb[12].mxu1 %v953_v36 }
  0x62   :  { %394 = vmatprep.mubr.bf16.mxu0 %v1036_v0  ;;  %507 = vmatprep.mubr.bf16.mxu1 %v1036_v0 }
  0x69   :  { %395 = vmatmul.mubr.bf16.gmra.mrb[16].mxu0 %v954_v37  ;;  %508 = vmatmul.mubr.bf16.gmra.mrb[16].mxu1 %v954_v37 }
  0x6a   :  { %404 = vmatprep.mubr.bf16.mxu0 %v1036_v0  ;;  %517 = vmatprep.mubr.bf16.mxu1 %v1036_v0 }
  0x71   :  { %405 = vmatmul.mubr.bf16.gmra.mrb[20].mxu0 %v955_v38  ;;  %518 = vmatmul.mubr.bf16.gmra.mrb[20].mxu1 %v955_v38 }
  0x72   :  { %414 = vmatprep.mubr.bf16.mxu0 %v1036_v0  ;;  %527 = vmatprep.mubr.bf16.mxu1 %v1036_v0 }
  0x79   :  { %415 = vmatmul.mubr.bf16.gmra.mrb[24].mxu0 %v956_v39  ;;  %528 = vmatmul.mubr.bf16.gmra.mrb[24].mxu1 %v956_v39 }
  0x7a   :  { %424 = vmatprep.mubr.bf16.mxu0 %v1036_v0  ;;  %537 = vmatprep.mubr.bf16.mxu1 %v1036_v0 }
  0x81   :  { %425 = vmatmul.mubr.bf16.gmra.mrb[28].mxu0 %v957_v40  ;;  %538 = vmatmul.mubr.bf16.gmra.mrb[28].mxu1 %v957_v40 }
 0x11c   :  { %v356_v52 = vpop.f32.mrb[0].mxu0  ;;  %v469_v53 = vpop.f32.mrb[0].mxu1 }
 0x11d   :  { %v357_v54 = vadd.f32 %v356_v52, %v1104_v48  ;;  %v470_v55 = vadd.f32 %v469_v53, %v1106_v49  ;;  %v358_v56 = vpop.f32.mrb[1].mxu0  ;;  %v471_v57 = vpop.f32.mrb[1].mxu1 }
 0x11e   :  { %v359_v58 = vadd.f32 %v358_v56, %v1108_v50  ;;  %v472_v59 = vadd.f32 %v471_v57, %v1110_v51  ;;  %v360_v60 = vpop.f32.mrb[2].mxu0  ;;  %v473_v61 = vpop.f32.mrb[2].mxu1 }
 0x11f   :  { %v361_v62 = vadd.f32 %v360_v60, %v1104_v48  ;;  %v474_v63 = vadd.f32 %v473_v61, %v1106_v49  ;;  %v362_v0 = vpop.f32.mrb[3].mxu0  ;;  %v475_v1 = vpop.f32.mrb[3].mxu1 }
 0x120   :  { %v862_v2 = vpack.c.bf16 %v359_v58, %v357_v54  ;;  %v863_v3 = vpack.c.bf16 %v472_v59, %v470_v55  ;;  %v363_v4 = vadd.f32 %v362_v0, %v1108_v50  ;;  %v476_v5 = vadd.f32 %v475_v1, %v1110_v51 }
 0x122   :  { %740 = vst [vmem:[#allocation7] sm:$0xff] %v862_v2  ;;  %741 = vst [vmem:[#allocation7 + $0x8] sm:$0xff] %v863_v3  ;;  %v864_v6 = vpack.c.bf16 %v363_v4, %v361_v62  ;;  %v865_v7 = vpack.c.bf16 %v476_v5, %v474_v63 }
 0x124   :  { %742 = vst [vmem:[#allocation7 + $0x10] sm:$0xff] %v864_v6  ;;  %743 = vst [vmem:[#allocation7 + $0x18] sm:$0xff] %v865_v7  ;;  %v366_v8 = vpop.f32.mrb[4].mxu0  ;;  %v479_v9 = vpop.f32.mrb[4].mxu1 }
 0x125   :  { %v367_v10 = vadd.f32 %v366_v8, %v1104_v48  ;;  %v480_v11 = vadd.f32 %v479_v9, %v1106_v49  ;;  %v368_v12 = vpop.f32.mrb[5].mxu0  ;;  %v481_v13 = vpop.f32.mrb[5].mxu1 }
 0x126   :  { %v369_v14 = vadd.f32 %v368_v12, %v1108_v50  ;;  %v482_v15 = vadd.f32 %v481_v13, %v1110_v51  ;;  %v370_v16 = vpop.f32.mrb[6].mxu0  ;;  %v483_v17 = vpop.f32.mrb[6].mxu1 }
 0x127   :  { %v371_v18 = vadd.f32 %v370_v16, %v1104_v48  ;;  %v484_v19 = vadd.f32 %v483_v17, %v1106_v49  ;;  %v372_v20 = vpop.f32.mrb[7].mxu0  ;;  %v485_v21 = vpop.f32.mrb[7].mxu1 }
 0x128   :  { %v866_v22 = vpack.c.bf16 %v369_v14, %v367_v10  ;;  %v867_v23 = vpack.c.bf16 %v482_v15, %v480_v11  ;;  %v373_v24 = vadd.f32 %v372_v20, %v1108_v50  ;;  %v486_v25 = vadd.f32 %v485_v21, %v1110_v51 }
 0x12a   :  { %744 = vst [vmem:[#allocation7 + $0x20] sm:$0xff] %v866_v22  ;;  %745 = vst [vmem:[#allocation7 + $0x28] sm:$0xff] %v867_v23  ;;  %v868_v26 = vpack.c.bf16 %v373_v24, %v371_v18  ;;  %v869_v27 = vpack.c.bf16 %v486_v25, %v484_v19 }
 0x12c   :  { %746 = vst [vmem:[#allocation7 + $0x30] sm:$0xff] %v868_v26  ;;  %747 = vst [vmem:[#allocation7 + $0x38] sm:$0xff] %v869_v27  ;;  %v376_v28 = vpop.f32.mrb[8].mxu0  ;;  %v489_v29 = vpop.f32.mrb[8].mxu1 }
 0x12d   :  { %v377_v30 = vadd.f32 %v376_v28, %v1104_v48  ;;  %v490_v31 = vadd.f32 %v489_v29, %v1106_v49  ;;  %v378_v32 = vpop.f32.mrb[9].mxu0  ;;  %v491_v33 = vpop.f32.mrb[9].mxu1 }
 0x12e   :  { %v379_v34 = vadd.f32 %v378_v32, %v1108_v50  ;;  %v492_v35 = vadd.f32 %v491_v33, %v1110_v51  ;;  %v380_v36 = vpop.f32.mrb[10].mxu0  ;;  %v493_v37 = vpop.f32.mrb[10].mxu1 }
 0x12f   :  { %v381_v38 = vadd.f32 %v380_v36, %v1104_v48  ;;  %v494_v39 = vadd.f32 %v493_v37, %v1106_v49  ;;  %v382_v40 = vpop.f32.mrb[11].mxu0  ;;  %v495_v41 = vpop.f32.mrb[11].mxu1 }
 0x130   :  { %v870_v42 = vpack.c.bf16 %v379_v34, %v377_v30  ;;  %v871_v43 = vpack.c.bf16 %v492_v35, %v490_v31  ;;  %v383_v44 = vadd.f32 %v382_v40, %v1108_v50  ;;  %v496_v45 = vadd.f32 %v495_v41, %v1110_v51 }
 0x132   :  { %748 = vst [vmem:[#allocation7 + $0x40] sm:$0xff] %v870_v42  ;;  %749 = vst [vmem:[#allocation7 + $0x48] sm:$0xff] %v871_v43  ;;  %v872_v46 = vpack.c.bf16 %v383_v44, %v381_v38  ;;  %v873_v47 = vpack.c.bf16 %v496_v45, %v494_v39 }
 0x134   :  { %750 = vst [vmem:[#allocation7 + $0x50] sm:$0xff] %v872_v46  ;;  %751 = vst [vmem:[#allocation7 + $0x58] sm:$0xff] %v873_v47  ;;  %v386_v52 = vpop.f32.mrb[12].mxu0  ;;  %v499_v53 = vpop.f32.mrb[12].mxu1 }
 0x135   :  { %v387_v54 = vadd.f32 %v386_v52, %v1104_v48  ;;  %v500_v55 = vadd.f32 %v499_v53, %v1106_v49  ;;  %v388_v56 = vpop.f32.mrb[13].mxu0  ;;  %v501_v57 = vpop.f32.mrb[13].mxu1 }
 0x136   :  { %v389_v58 = vadd.f32 %v388_v56, %v1108_v50  ;;  %v502_v59 = vadd.f32 %v501_v57, %v1110_v51  ;;  %v390_v60 = vpop.f32.mrb[14].mxu0  ;;  %v503_v61 = vpop.f32.mrb[14].mxu1 }
 0x137   :  { %v391_v62 = vadd.f32 %v390_v60, %v1104_v48  ;;  %v504_v63 = vadd.f32 %v503_v61, %v1106_v49  ;;  %v392_v0 = vpop.f32.mrb[15].mxu0  ;;  %v505_v1 = vpop.f32.mrb[15].mxu1 }
 0x138   :  { %v874_v2 = vpack.c.bf16 %v389_v58, %v387_v54  ;;  %v875_v3 = vpack.c.bf16 %v502_v59, %v500_v55  ;;  %v393_v4 = vadd.f32 %v392_v0, %v1108_v50  ;;  %v506_v5 = vadd.f32 %v505_v1, %v1110_v51 }
 0x13a   :  { %752 = vst [vmem:[#allocation7 + $0x60] sm:$0xff] %v874_v2  ;;  %753 = vst [vmem:[#allocation7 + $0x68] sm:$0xff] %v875_v3  ;;  %v876_v6 = vpack.c.bf16 %v393_v4, %v391_v62  ;;  %v877_v7 = vpack.c.bf16 %v506_v5, %v504_v63 }
 0x13c   :  { %754 = vst [vmem:[#allocation7 + $0x70] sm:$0xff] %v876_v6  ;;  %755 = vst [vmem:[#allocation7 + $0x78] sm:$0xff] %v877_v7  ;;  %v396_v8 = vpop.f32.mrb[16].mxu0  ;;  %v509_v9 = vpop.f32.mrb[16].mxu1 }
 0x13d   :  { %v397_v10 = vadd.f32 %v396_v8, %v1104_v48  ;;  %v510_v11 = vadd.f32 %v509_v9, %v1106_v49  ;;  %v398_v12 = vpop.f32.mrb[17].mxu0  ;;  %v511_v13 = vpop.f32.mrb[17].mxu1 }
 0x13e   :  { %v399_v14 = vadd.f32 %v398_v12, %v1108_v50  ;;  %v512_v15 = vadd.f32 %v511_v13, %v1110_v51  ;;  %v400_v16 = vpop.f32.mrb[18].mxu0  ;;  %v513_v17 = vpop.f32.mrb[18].mxu1 }
 0x13f   :  { %v401_v18 = vadd.f32 %v400_v16, %v1104_v48  ;;  %v514_v19 = vadd.f32 %v513_v17, %v1106_v49  ;;  %v402_v20 = vpop.f32.mrb[19].mxu0  ;;  %v515_v21 = vpop.f32.mrb[19].mxu1 }
 0x140   :  { %v878_v22 = vpack.c.bf16 %v399_v14, %v397_v10  ;;  %v879_v23 = vpack.c.bf16 %v512_v15, %v510_v11  ;;  %v403_v24 = vadd.f32 %v402_v20, %v1108_v50  ;;  %v516_v25 = vadd.f32 %v515_v21, %v1110_v51 }
 0x142   :  { %756 = vst [vmem:[#allocation7 + $0x80] sm:$0xff] %v878_v22  ;;  %757 = vst [vmem:[#allocation7 + $0x88] sm:$0xff] %v879_v23  ;;  %v880_v26 = vpack.c.bf16 %v403_v24, %v401_v18  ;;  %v881_v27 = vpack.c.bf16 %v516_v25, %v514_v19 }
 0x144   :  { %758 = vst [vmem:[#allocation7 + $0x90] sm:$0xff] %v880_v26  ;;  %759 = vst [vmem:[#allocation7 + $0x98] sm:$0xff] %v881_v27  ;;  %v406_v28 = vpop.f32.mrb[20].mxu0  ;;  %v519_v29 = vpop.f32.mrb[20].mxu1 }
 0x145   :  { %v407_v30 = vadd.f32 %v406_v28, %v1104_v48  ;;  %v520_v31 = vadd.f32 %v519_v29, %v1106_v49  ;;  %v408_v32 = vpop.f32.mrb[21].mxu0  ;;  %v521_v33 = vpop.f32.mrb[21].mxu1 }
 0x146   :  { %v409_v34 = vadd.f32 %v408_v32, %v1108_v50  ;;  %v522_v35 = vadd.f32 %v521_v33, %v1110_v51  ;;  %v410_v36 = vpop.f32.mrb[22].mxu0  ;;  %v523_v37 = vpop.f32.mrb[22].mxu1 }
 0x147   :  { %v411_v38 = vadd.f32 %v410_v36, %v1104_v48  ;;  %v524_v39 = vadd.f32 %v523_v37, %v1106_v49  ;;  %v412_v40 = vpop.f32.mrb[23].mxu0  ;;  %v525_v41 = vpop.f32.mrb[23].mxu1 }
 0x148   :  { %v882_v42 = vpack.c.bf16 %v409_v34, %v407_v30  ;;  %v883_v43 = vpack.c.bf16 %v522_v35, %v520_v31  ;;  %v413_v44 = vadd.f32 %v412_v40, %v1108_v50  ;;  %v526_v45 = vadd.f32 %v525_v41, %v1110_v51 }
 0x14a   :  { %760 = vst [vmem:[#allocation7 + $0xa0] sm:$0xff] %v882_v42  ;;  %761 = vst [vmem:[#allocation7 + $0xa8] sm:$0xff] %v883_v43  ;;  %v884_v46 = vpack.c.bf16 %v413_v44, %v411_v38  ;;  %v885_v47 = vpack.c.bf16 %v526_v45, %v524_v39 }
 0x14c   :  { %762 = vst [vmem:[#allocation7 + $0xb0] sm:$0xff] %v884_v46  ;;  %763 = vst [vmem:[#allocation7 + $0xb8] sm:$0xff] %v885_v47  ;;  %v416_v52 = vpop.f32.mrb[24].mxu0  ;;  %v529_v53 = vpop.f32.mrb[24].mxu1 }
 0x14d   :  { %v417_v54 = vadd.f32 %v416_v52, %v1104_v48  ;;  %v530_v55 = vadd.f32 %v529_v53, %v1106_v49  ;;  %v418_v56 = vpop.f32.mrb[25].mxu0  ;;  %v531_v57 = vpop.f32.mrb[25].mxu1 }
 0x14e   :  { %v419_v58 = vadd.f32 %v418_v56, %v1108_v50  ;;  %v532_v59 = vadd.f32 %v531_v57, %v1110_v51  ;;  %v420_v60 = vpop.f32.mrb[26].mxu0  ;;  %v533_v61 = vpop.f32.mrb[26].mxu1 }
 0x14f   :  { %v421_v62 = vadd.f32 %v420_v60, %v1104_v48  ;;  %v534_v63 = vadd.f32 %v533_v61, %v1106_v49  ;;  %v422_v0 = vpop.f32.mrb[27].mxu0  ;;  %v535_v1 = vpop.f32.mrb[27].mxu1 }
 0x150   :  { %v886_v2 = vpack.c.bf16 %v419_v58, %v417_v54  ;;  %v887_v3 = vpack.c.bf16 %v532_v59, %v530_v55  ;;  %v423_v4 = vadd.f32 %v422_v0, %v1108_v50  ;;  %v536_v5 = vadd.f32 %v535_v1, %v1110_v51 }
 0x152   :  { %764 = vst [vmem:[#allocation7 + $0xc0] sm:$0xff] %v886_v2  ;;  %765 = vst [vmem:[#allocation7 + $0xc8] sm:$0xff] %v887_v3  ;;  %v888_v6 = vpack.c.bf16 %v423_v4, %v421_v62  ;;  %v889_v7 = vpack.c.bf16 %v536_v5, %v534_v63 }
 0x154   :  { %766 = vst [vmem:[#allocation7 + $0xd0] sm:$0xff] %v888_v6  ;;  %767 = vst [vmem:[#allocation7 + $0xd8] sm:$0xff] %v889_v7  ;;  %v426_v8 = vpop.f32.mrb[28].mxu0  ;;  %v539_v9 = vpop.f32.mrb[28].mxu1 }
 0x155   :  { %v427_v10 = vadd.f32 %v426_v8, %v1104_v48  ;;  %v540_v11 = vadd.f32 %v539_v9, %v1106_v49  ;;  %v428_v12 = vpop.f32.mrb[29].mxu0  ;;  %v541_v13 = vpop.f32.mrb[29].mxu1 }
 0x156   :  { %v429_v14 = vadd.f32 %v428_v12, %v1108_v50  ;;  %v542_v15 = vadd.f32 %v541_v13, %v1110_v51  ;;  %v430_v16 = vpop.f32.mrb[30].mxu0  ;;  %v543_v17 = vpop.f32.mrb[30].mxu1 }
 0x157   :  { %v431_v18 = vadd.f32 %v430_v16, %v1104_v48  ;;  %v544_v19 = vadd.f32 %v543_v17, %v1106_v49  ;;  %v432_v20 = vpop.f32.mrb[31].mxu0  ;;  %v545_v21 = vpop.f32.mrb[31].mxu1 }
 0x158   :  { %v890_v22 = vpack.c.bf16 %v429_v14, %v427_v10  ;;  %v891_v23 = vpack.c.bf16 %v542_v15, %v540_v11  ;;  %v433_v24 = vadd.f32 %v432_v20, %v1108_v50  ;;  %v546_v25 = vadd.f32 %v545_v21, %v1110_v51 }
 0x15a   :  { %768 = vst [vmem:[#allocation7 + $0xe0] sm:$0xff] %v890_v22  ;;  %769 = vst [vmem:[#allocation7 + $0xe8] sm:$0xff] %v891_v23  ;;  %v892_v26 = vpack.c.bf16 %v433_v24, %v431_v18  ;;  %v893_v27 = vpack.c.bf16 %v546_v25, %v544_v19 }
 0x15c   :  { %770 = vst [vmem:[#allocation7 + $0xf0] sm:$0xff] %v892_v26  ;;  %771 = vst [vmem:[#allocation7 + $0xf8] sm:$0xff] %v893_v27 }
 0x15d   :  { %1013 = shalt.err (!%p1010_p6)
}
 0x15e   :  { %s1014_s17 = scalar_lea.hbm %s1194_s3, 4096 }
 0x15f   :  { %p1015_p7 = scmp.ne.s32.totalorder %s1194_s3, %s1014_s17  ;;  %p1018_p8 = scmp.lt.u32.totalorder %s1014_s17, %s1194_s3 }
 0x161   :  { %p1020_p9 = pnand %p1018_p8, %p1015_p7 }
 0x163   :  { %1023 = shalt.err (!%p1020_p9)
}
 0x164   :  { %783 = dma.vmem_to_hbm [thread:$0]  %s778_s13, 4096, %s1194_s3, [#allocation4], %s1034_s0, %s1034_s0, %s1035_s9  }
 0x165   :  { %1028 = dma.done.wait [#allocation4], 4096  }
 0x166   :  { %1029 = vsyncadd [#allocation4], 4294963200 }
 0x167   :  { %787 = vsyncpa [#allocation3], 1 }
 0x168   :  { %788 = vsyncpa [#allocation6], 1 }
 0x169   :  { %789 = vsyncpa [#allocation4], 1 }

</bundles_post_ra>
